<compile_context>
chip_gen: v7x
topology: tpu7x:2x2x1
jax: 0.10.0
libtpu: 0.0.40
codegen_flags: <defaults>
</compile_context>

<pallas_src>
import jax
import jax.numpy as jnp
from jax.experimental import pallas as pl
from jax.experimental.pallas import tpu as pltpu

N_EXPRESSION = 8
C_MID = 16
E_PAD = 128          # lane-dense output slab; expression occupies the first 8 lanes


# ----------------------------------------------------------------------------
# Fused per-batch-tile kernel:
#   conv3x3 (3 wide MXU matmuls) + bias + ReLU + global average pool + head.
#
#   x_ref    : (B_TILE, H+2, (W+2)*Cin)  bf16  zero-padded NHWC images,
#                                              (W+2, Cin) flattened on lanes
#   wconv_ref: (3*(W+2)*Cin, W*C_MID)    bf16  banded conv matrix (dw, w folded in)
#   bconv_ref: (1, W*C_MID)              f32   conv bias tiled over W
#   whead_ref: (W*C_MID, E_PAD)          f32   head weights tiled over W, * 1/(H*W)
#   bhead_ref: (1, E_PAD)                f32   head bias (zero-padded to 128 lanes)
#   o_ref    : (B_TILE, E_PAD)           f32   expression vectors (first 8 lanes valid)
# ----------------------------------------------------------------------------
def _emonet_fused_kernel(x_ref, wconv_ref, bconv_ref, whead_ref, bhead_ref, o_ref):
    b_tile, hp, wcin = x_ref.shape      # wcin = (W+2)*Cin
    h_out = hp - 2
    n_cols = bconv_ref.shape[1]         # W * C_MID

    xv = x_ref[...]                     # one VMEM load of the whole batch tile

    # Conv as 3 wide MXU matmuls (one per vertical tap offset dh). K=(W+2)*Cin,
    # N = W*C_MID = full 256-lane MXU width.  Bias broadcast hoisted (once).
    acc = jnp.broadcast_to(bconv_ref[...], (b_tile * h_out, n_cols))
    for a in range(3):                  # static 3-iteration unroll
        rows = xv[:, a:a + h_out, :].reshape(b_tile * h_out, wcin)
        acc = acc + jnp.dot(rows, wconv_ref[a * wcin:(a + 1) * wcin, :],
                            preferred_element_type=jnp.float32)
    feat = jnp.maximum(acc, 0.0)        # ReLU in f32 (VPU-safe on v5e)

    # Global average pool: sum over H here (sublane-group reduce); the sum over
    # W and the 1/(H*W) factor are folded into the head matrix.
    pooled = feat.reshape(b_tile, h_out, n_cols).sum(axis=1)      # (B_TILE, W*C_MID)

    o_ref[...] = (jnp.dot(pooled, whead_ref[...],
                          preferred_element_type=jnp.float32)
                  + bhead_ref[...])


# ----------------------------------------------------------------------------
# Wrapper-side weight restructuring
# ----------------------------------------------------------------------------
def _build_conv_matrix(wk, w_out, wp):
    """Banded matrix M with M[a*wp*Cin + p*Cin + c, w*C_MID + o] = wk[a,d,c,o]
    iff p == w + d, so that (padded row slab) @ M == conv3x3 along W for tap dh=a."""
    kh, kw, cin, c_mid = wk.shape
    place = (jnp.arange(kw)[:, None, None] + jnp.arange(w_out)[None, None, :]
             == jnp.arange(wp)[None, :, None]).astype(wk.dtype)   # (kw, wp, w_out)
    m = jnp.einsum('dpw,adco->apcwo', place, wk)                  # (kh, wp, cin, w_out, c_mid)
    return m.reshape(kh * wp * cin, w_out * c_mid)


# ----------------------------------------------------------------------------
# Synthetic "EmoNet" expression extractor (NCHW input, like PyTorch)
# ----------------------------------------------------------------------------
def emonet_expression(x_nchw, params):
    n, cin, h, w = x_nchw.shape
    hp, wp = h + 2, w + 2

    # NHWC, zero pad, flatten (W+2, Cin) onto the lane axis, cast to bf16 (MXU).
    # TODO(synk): at real EmoNet resolutions fold this pad/transpose into the
    # kernel (in-kernel halo masking) to avoid the extra HBM round trip.
    xh = jnp.transpose(x_nchw, (0, 2, 3, 1)).astype(jnp.bfloat16)
    xp = jnp.pad(xh, ((0, 0), (1, 1), (1, 1), (0, 0)))
    x2 = xp.reshape(n, hp, wp * cin)

    # Batch tiling: >= 2 grid steps when possible so v7x shards the batch over
    # its 2 TensorCores; tile size capped so VMEM stays bounded for big batches.
    b_tile = max(1, min(32, pl.cdiv(n, 2)))
    num_tiles = pl.cdiv(n, b_tile)
    pad_n = num_tiles * b_tile - n
    if pad_n:
        x2 = jnp.pad(x2, ((0, pad_n), (0, 0), (0, 0)))

    # Restructured weights: banded conv matrix (dw/w folded in, bf16 for MXU);
    # head matrix with the W-sum of the pool and 1/(H*W) folded in, padded to a
    # lane-dense 128-wide output; biases stay f32.
    wconv = _build_conv_matrix(params["wk"].astype(jnp.float32), w, wp).astype(jnp.bfloat16)
    bconv = jnp.tile(params["bc"].astype(jnp.float32), w).reshape(1, w * C_MID)
    whead = jnp.tile(params["wh"].astype(jnp.float32), (w, 1)) * (1.0 / (h * w))
    whead = jnp.pad(whead, ((0, 0), (0, E_PAD - N_EXPRESSION)))
    bhead = jnp.pad(params["bh"].astype(jnp.float32).reshape(1, N_EXPRESSION),
                    ((0, 0), (0, E_PAD - N_EXPRESSION)))

    flops = int(num_tiles * (2 * b_tile * h * (3 * wp * cin) * (w * C_MID)
                             + 2 * b_tile * (w * C_MID) * E_PAD))
    bytes_accessed = int(x2.size * 2
                         + num_tiles * (wconv.size * 2
                                        + (bconv.size + whead.size + bhead.size) * 4)
                         + num_tiles * b_tile * E_PAD * 4)

    out = pl.pallas_call(
        _emonet_fused_kernel,
        out_shape=jax.ShapeDtypeStruct((num_tiles, b_tile, E_PAD), jnp.float32),
        grid=(num_tiles,),
        in_specs=[
            pl.BlockSpec((b_tile, hp, wp * cin), lambda i: (i, 0, 0)),
            pl.BlockSpec((3 * wp * cin, w * C_MID), lambda i: (0, 0)),
            pl.BlockSpec((1, w * C_MID), lambda i: (0, 0)),
            pl.BlockSpec((w * C_MID, E_PAD), lambda i: (0, 0)),
            pl.BlockSpec((1, E_PAD), lambda i: (0, 0)),
        ],
        out_specs=pl.BlockSpec((None, b_tile, E_PAD), lambda i: (i, 0, 0)),
        compiler_params=pltpu.CompilerParams(
            dimension_semantics=("parallel",),      # v7x: 2 batch tiles -> 2 TCs
            vmem_limit_bytes=32 * 1024 * 1024),     # bounded on all generations
        cost_estimate=pl.CostEstimate(
            flops=flops, transcendentals=0, bytes_accessed=bytes_accessed),
    )(x2, wconv, bconv, whead, bhead)

    return out.reshape(num_tiles * b_tile, E_PAD)[:n, :N_EXPRESSION]


@jax.jit
def emotion_loss(predict_image, img, params):
    # Single pass: both images concatenated along batch -> the network runs once
    # on 2N images instead of twice on N.
    both = jnp.concatenate([predict_image, img], axis=0)
    expr = emonet_expression(both, params)                    # (2N, 8)
    n = predict_image.shape[0]
    pre_emo, img_emo = expr[:n], expr[n:]
    # Trivial (N, 8) L1 stays in plain JAX (matches nn.L1Loss mean reduction);
    # a standalone Pallas kernel here is pure launch overhead.
    return jnp.mean(jnp.abs(pre_emo - img_emo))


if __name__ == "__main__":
    key = jax.random.PRNGKey(0)
    k1, k2, k3, k4, k5, k6 = jax.random.split(key, 6)

    N, CIN, H, W = 2, 3, 16, 16

    # Deterministic synthetic "EmoNet" parameters.
    params = {
        "wk": 0.1 * jax.random.normal(k1, (3, 3, CIN, C_MID), jnp.float32),
        "bc": 0.1 * jax.random.normal(k2, (C_MID,), jnp.float32),
        "wh": 0.1 * jax.random.normal(k3, (C_MID, N_EXPRESSION), jnp.float32),
        "bh": 0.1 * jax.random.normal(k4, (N_EXPRESSION,), jnp.float32),
    }

    predict_image = jax.random.normal(k5, (N, CIN, H, W), jnp.float32)
    img = jax.random.normal(k6, (N, CIN, H, W), jnp.float32)

    loss = emotion_loss(predict_image, img, params)
    jax.block_until_ready(loss)
    print("KERNEL_OK")
</pallas_src>

<mosaic_0001>
module attributes {stable_mosaic.version = 11 : i64} {
  func.func @_emonet_fused_kernel(%arg0: i32, %arg1: memref<2x18x54xbf16, #tpu.memory_space<vmem>>, %arg2: memref<162x256xbf16, #tpu.memory_space<vmem>>, %arg3: memref<1x256xf32, #tpu.memory_space<vmem>>, %arg4: memref<256x128xf32, #tpu.memory_space<vmem>>, %arg5: memref<1x128xf32, #tpu.memory_space<vmem>>, %arg6: memref<1x2x128xf32, #tpu.memory_space<vmem>>) attributes {dimension_semantics = [#tpu.dimension_semantics<parallel>], iteration_bounds = array<i64: 2>, scalar_prefetch = 0 : i64, scratch_operands = 0 : i64, tpu.core_type = #tpu.core_type<tc>, window_params = [{transform_indices = @transform_0, window_bounds = array<i64: 2, 18, 54>}, {pipeline_mode = #tpu.pipeline_mode<synchronous>, transform_indices = @transform_1, window_bounds = array<i64: 162, 256>}, {pipeline_mode = #tpu.pipeline_mode<synchronous>, transform_indices = @transform_2, window_bounds = array<i64: 1, 256>}, {pipeline_mode = #tpu.pipeline_mode<synchronous>, transform_indices = @transform_3, window_bounds = array<i64: 256, 128>}, {pipeline_mode = #tpu.pipeline_mode<synchronous>, transform_indices = @transform_4, window_bounds = array<i64: 1, 128>}, {transform_indices = @transform_5, window_bounds = array<i64: 1, 2, 128>}]} {
    %c0 = arith.constant 0 : index
    %c0_0 = arith.constant 0 : index
    %c0_1 = arith.constant 0 : index
    %0 = vector.load %arg1[%c0, %c0_0, %c0_1] : memref<2x18x54xbf16, #tpu.memory_space<vmem>>, vector<2x18x54xbf16>
    %c0_2 = arith.constant 0 : index
    %c0_3 = arith.constant 0 : index
    %1 = vector.load %arg3[%c0_2, %c0_3] : memref<1x256xf32, #tpu.memory_space<vmem>>, vector<1x256xf32>
    %2 = vector.shape_cast %1 : vector<1x256xf32> to vector<1x256xf32>
    %3 = vector.broadcast %2 : vector<1x256xf32> to vector<32x256xf32>
    %4 = vector.extract_strided_slice %0 {offsets = [0, 0, 0], sizes = [2, 16, 54], strides = [1, 1, 1]} : vector<2x18x54xbf16> to vector<2x16x54xbf16>
    %5 = vector.shape_cast %4 : vector<2x16x54xbf16> to vector<32x54xbf16>
    %c0_4 = arith.constant 0 : index
    %c0_5 = arith.constant 0 : index
    %6 = vector.load %arg2[%c0_4, %c0_5] : memref<162x256xbf16, #tpu.memory_space<vmem>>, vector<54x256xbf16>
    %cst = arith.constant dense<0.000000e+00> : vector<32x256xf32>
    %7 = tpu.matmul %5, %6, %cst {dimension_numbers = #tpu.dot_dimension_numbers<[1], [0], [0], [1], [0, 0, 1, 1], [], []>} : vector<32x54xbf16>, vector<54x256xbf16>, vector<32x256xf32> -> vector<32x256xf32>
    %8 = arith.addf %3, %7 : vector<32x256xf32>
    %9 = vector.extract_strided_slice %0 {offsets = [0, 1, 0], sizes = [2, 16, 54], strides = [1, 1, 1]} : vector<2x18x54xbf16> to vector<2x16x54xbf16>
    %10 = vector.shape_cast %9 : vector<2x16x54xbf16> to vector<32x54xbf16>
    %c54 = arith.constant 54 : index
    %c0_6 = arith.constant 0 : index
    %11 = vector.load %arg2[%c54, %c0_6] : memref<162x256xbf16, #tpu.memory_space<vmem>>, vector<54x256xbf16>
    %cst_7 = arith.constant dense<0.000000e+00> : vector<32x256xf32>
    %12 = tpu.matmul %10, %11, %cst_7 {dimension_numbers = #tpu.dot_dimension_numbers<[1], [0], [0], [1], [0, 0, 1, 1], [], []>} : vector<32x54xbf16>, vector<54x256xbf16>, vector<32x256xf32> -> vector<32x256xf32>
    %13 = arith.addf %8, %12 : vector<32x256xf32>
    %14 = vector.extract_strided_slice %0 {offsets = [0, 2, 0], sizes = [2, 16, 54], strides = [1, 1, 1]} : vector<2x18x54xbf16> to vector<2x16x54xbf16>
    %15 = vector.shape_cast %14 : vector<2x16x54xbf16> to vector<32x54xbf16>
    %c108 = arith.constant 108 : index
    %c0_8 = arith.constant 0 : index
    %16 = vector.load %arg2[%c108, %c0_8] : memref<162x256xbf16, #tpu.memory_space<vmem>>, vector<54x256xbf16>
    %cst_9 = arith.constant dense<0.000000e+00> : vector<32x256xf32>
    %17 = tpu.matmul %15, %16, %cst_9 {dimension_numbers = #tpu.dot_dimension_numbers<[1], [0], [0], [1], [0, 0, 1, 1], [], []>} : vector<32x54xbf16>, vector<54x256xbf16>, vector<32x256xf32> -> vector<32x256xf32>
    %18 = arith.addf %13, %17 : vector<32x256xf32>
    %cst_10 = arith.constant 0.000000e+00 : f32
    %19 = vector.broadcast %cst_10 : f32 to vector<32x256xf32>
    %20 = arith.maximumf %18, %19 : vector<32x256xf32>
    %21 = vector.shape_cast %20 : vector<32x256xf32> to vector<2x16x256xf32>
    %cst_11 = arith.constant dense<0.000000e+00> : vector<2x256xf32>
    %22 = vector.multi_reduction <add>, %21, %cst_11 [1] : vector<2x16x256xf32> to vector<2x256xf32>
    %c0_12 = arith.constant 0 : index
    %c0_13 = arith.constant 0 : index
    %23 = vector.load %arg4[%c0_12, %c0_13] : memref<256x128xf32, #tpu.memory_space<vmem>>, vector<256x128xf32>
    %cst_14 = arith.constant dense<0.000000e+00> : vector<2x128xf32>
    %24 = tpu.matmul %22, %23, %cst_14 {dimension_numbers = #tpu.dot_dimension_numbers<[1], [0], [0], [1], [0, 0, 1, 1], [], []>} : vector<2x256xf32>, vector<256x128xf32>, vector<2x128xf32> -> vector<2x128xf32>
    %c0_15 = arith.constant 0 : index
    %c0_16 = arith.constant 0 : index
    %25 = vector.load %arg5[%c0_15, %c0_16] : memref<1x128xf32, #tpu.memory_space<vmem>>, vector<1x128xf32>
    %26 = vector.broadcast %25 : vector<1x128xf32> to vector<2x128xf32>
    %27 = arith.addf %24, %26 : vector<2x128xf32>
    %c0_17 = arith.constant 0 : index
    %c0_18 = arith.constant 0 : index
    %c0_19 = arith.constant 0 : index
    %28 = vector.load %arg6[%c0_17, %c0_18, %c0_19] : memref<1x2x128xf32, #tpu.memory_space<vmem>>, vector<1x2x128xf32>
    %29 = vector.shape_cast %28 : vector<1x2x128xf32> to vector<2x128xf32>
    %30 = vector.shape_cast %27 : vector<2x128xf32> to vector<1x2x128xf32>
    tpu.vector_store %arg6[%c0_17, %c0_18, %c0_19], %30 {strides = array<i32>} : memref<1x2x128xf32, #tpu.memory_space<vmem>>, vector<1x2x128xf32>,
    return
  }
  func.func @transform_0(%arg0: i32) -> (i32, i32, i32) {
    %c0_i32 = arith.constant 0 : i32
    %c0_i32_0 = arith.constant 0 : i32
    %c0_i32_1 = arith.constant 0 : i32
    return %arg0, %c0_i32, %c0_i32_0 : i32, i32, i32
  }
  func.func @transform_1(%arg0: i32) -> (i32, i32) {
    %c0_i32 = arith.constant 0 : i32
    %c0_i32_0 = arith.constant 0 : i32
    %c0_i32_1 = arith.constant 0 : i32
    return %c0_i32, %c0_i32_0 : i32, i32
  }
  func.func @transform_2(%arg0: i32) -> (i32, i32) {
    %c0_i32 = arith.constant 0 : i32
    %c0_i32_0 = arith.constant 0 : i32
    %c0_i32_1 = arith.constant 0 : i32
    return %c0_i32, %c0_i32_0 : i32, i32
  }
  func.func @transform_3(%arg0: i32) -> (i32, i32) {
    %c0_i32 = arith.constant 0 : i32
    %c0_i32_0 = arith.constant 0 : i32
    %c0_i32_1 = arith.constant 0 : i32
    return %c0_i32, %c0_i32_0 : i32, i32
  }
  func.func @transform_4(%arg0: i32) -> (i32, i32) {
    %c0_i32 = arith.constant 0 : i32
    %c0_i32_0 = arith.constant 0 : i32
    %c0_i32_1 = arith.constant 0 : i32
    return %c0_i32, %c0_i32_0 : i32, i32
  }
  func.func @transform_5(%arg0: i32) -> (i32, i32, i32) {
    %c0_i32 = arith.constant 0 : i32
    %c0_i32_0 = arith.constant 0 : i32
    %c0_i32_1 = arith.constant 0 : i32
    return %arg0, %c0_i32, %c0_i32_0 : i32, i32, i32
  }
}

</mosaic_0001>

<bundles_post_ra>
// kernel: tile.13
= control target key start
LH: loop header
LB: loop body
LE: loop exit
PB: predicated region body
PF: predicated region fallthrough
CT: control target
= control target key end

     0   :  { %s28_s0 = inlined_call_operand.vmem [shape: f32[16], index: 0, kind: input, shape index: {}]   ;;  %s29_s1 = inlined_call_operand.vmem [shape: f32[16,16], index: 1, kind: output, shape index: {}]  }
   0x1   :  { %v4_v0 = vld [vmem:[%s28_s0] ss:$0 sm:$0xff] }
   0x2   :  { %5 = vst [vmem:[%s29_s1] sm:$0xff] %v4_v0  ;;  %8 = vst [vmem:[%s29_s1 + $0x8] sm:$0xff] %v4_v0 }

// kernel: tile.14
= control target key start
LH: loop header
LB: loop body
LE: loop exit
PB: predicated region body
PF: predicated region fallthrough
CT: control target
= control target key end

     0   :  { %s7_s6 = smov 3  ;;  %s21_s9 = smov 3  ;;  %vm4_vm0 = vcmask 130048   ;;  %vm11_vm1 = vcmask 1048448   ;;  %vm18_vm2 = vcmask 917248   ;;  %vm25_vm3 = vcmask 786048   ;;  %s128_s0 = inlined_call_operand.vmem [shape: f32[16,16], index: 0, kind: input, shape index: {}]   ;;  %s129_s1 = inlined_call_operand.vmem [shape: f32[1,256], index: 1, kind: output, shape index: {}]  }
   0x1   :  { %v66_v0 = vld [vmem:[%s128_s0 + $0x7] ss:$8 sm:%s7_s6]   ;;  %s81_s10 = smov 112   ;;  %v68_v1 = vld [vmem:[%s128_s0 + $0x5] ss:$8 sm:%s21_s9]   ;;  %s14_s13 = smov 3 }
   0x2   :  { %9 = vrot.lane.b32.xlu0 %v66_v0, %s81_s10  ;;  %s82_s14 = smov 80   ;;  %v67_v2 = vld [vmem:[%s128_s0 + $0x6] ss:$8 sm:%s14_s13]   ;;  %s28_s17 = smov 3  ;;  %vm32_vm4 = vcmask 654848   ;;  %vm39_vm5 = vcmask 523648  }
   0x3   :  { %23 = vrot.lane.b32.xlu1 %v68_v1, %s82_s14  ;;  %v69_v3 = vld [vmem:[%s128_s0 + $0x4] ss:$8 sm:%s28_s17]   ;;  %s35_s20 = smov 3  ;;  %s42_s21 = smov 3  ;;  %vm46_vm6 = vcmask 392448   ;;  %vm53_vm7 = vcmask 261248  }
   0x4   :  { %s83_s22 = smov 96   ;;  %s84_s23 = smov 64   ;;  %v70_v4 = vld [vmem:[%s128_s0 + $0x3] ss:$8 sm:%s35_s20]   ;;  %v71_v5 = vld [vmem:[%s128_s0 + $0x2] ss:$8 sm:%s42_s21]  }
   0x5   :  { %s2_s26 = smov 3  ;;  %s49_s29 = smov 3 }
   0x6   :  { %16 = vrot.lane.b32.xlu0 %v67_v2, %s83_s22  ;;  %v3_v6 = vld [vmem:[%s128_s0] ss:$8 sm:%s2_s26]   ;;  %s85_s3 = smov 48   ;;  %s86_s4 = smov 32  }
   0x7   :  { %30 = vrot.lane.b32.xlu1 %v69_v3, %s84_s23  ;;  %5 = vst.msk [vmem:[#allocation0] ss:$8 sm:$0x3] %vm4_vm0, %v3_v6   ;;  %v72_v7 = vld [vmem:[%s128_s0 + $0x1] ss:$8 sm:%s49_s29]   ;;  %s87_s0 = smov 16  }
   0xa   :  { %37 = vrot.lane.b32.xlu0 %v70_v4, %s85_s3 }
   0xb   :  { %44 = vrot.lane.b32.xlu1 %v71_v5, %s86_s4 }
   0xe   :  { %51 = vrot.lane.b32.xlu0 %v72_v7, %s87_s0 }
  0x74   :  { %v10_v8 = vpop.permute.xlu0 %9  }
  0x75   :  { %12 = vst.msk [vmem:[#allocation0] ss:$8 sm:$0x3] %vm11_vm1, %v10_v8   ;;  %v24_v9 = vpop.permute.xlu1 %23  }
  0x78   :  { %v17_v10 = vpop.permute.xlu0 %16  }
  0x79   :  { %19 = vst.msk [vmem:[#allocation0] ss:$8 sm:$0x3] %vm18_vm2, %v17_v10   ;;  %v31_v11 = vpop.permute.xlu1 %30  }
  0x7a   :  { %26 = vst.msk [vmem:[#allocation0] ss:$8 sm:$0x3] %vm25_vm3, %v24_v9  }
  0x7b   :  { %33 = vst.msk [vmem:[#allocation0] ss:$8 sm:$0x3] %vm32_vm4, %v31_v11  }
  0x7c   :  { %v38_v12 = vpop.permute.xlu0 %37  }
  0x7d   :  { %40 = vst.msk [vmem:[#allocation0] ss:$8 sm:$0x3] %vm39_vm5, %v38_v12   ;;  %v45_v13 = vpop.permute.xlu1 %44  }
  0x7e   :  { %47 = vst.msk [vmem:[#allocation0] ss:$8 sm:$0x3] %vm46_vm6, %v45_v13  }
  0x80   :  { %v52_v14 = vpop.permute.xlu0 %51  }
  0x81   :  { %54 = vst.msk [vmem:[#allocation0] ss:$8 sm:$0x3] %vm53_vm7, %v52_v14  }
  0x88   :  { %v58_v15 = vld [vmem:[#allocation0] sm:$0x1]  ;;  %v62_v16 = vld [vmem:[#allocation0 + $0x8] sm:$0x1] }
  0x89   :  { %60 = vst [vmem:[%s129_s1] sm:$0x1] %v58_v15  ;;  %73 = vst [vmem:[%s129_s1 + $0x1] sm:$0x1] %v62_v16 }

// kernel: emotion_loss.1
= control target key start
LH: loop header
LB: loop body
LE: loop exit
PB: predicated region body
PF: predicated region fallthrough
CT: control target
= control target key end

     0   :  { %s1161_s18 = smov 0   ;;  %s1461_s0 = inlined_call_operand.vmem [shape: bf16[4,18,54], index: 0, kind: input, shape index: {}]   ;;  %s1462_s1 = inlined_call_operand.vmem [shape: bf16[162,256], index: 1, kind: input, shape index: {}]   ;;  %s1463_s2 = inlined_call_operand.vmem [shape: f32[1,256], index: 2, kind: input, shape index: {}]   ;;  %s1464_s3 = inlined_call_operand.vmem [shape: f32[256,128], index: 3, kind: input, shape index: {}]   ;;  %s1465_s4 = inlined_call_operand.vmem [shape: f32[1,128], index: 4, kind: input, shape index: {}]   ;;  %s1466_s5 = inlined_call_operand.vmem [shape: f32[2,2,128], index: 5, kind: output, shape index: {}]  }
   0x1 LB: > { %s1167_s19 = sadd.s32 4294967295, %s1128_s18   ;;  %p936_p0 = scmp.ge.s32.totalorder %s1128_s18, 1  ;;  %s1128_s18 = sphi %s1161_s18, %s15_s18  }
   0x2   : > { %p189_p1 = scmp.lt.s32.totalorder %s1128_s18, 3 }
   0x4   : > { %p190_p2 = pnand %p936_p0, %p189_p1 }
   0x5   : > { %vm471_vm0 = vcmask (!%p190_p2), 1044480   ;;  %v1085_v0 = vld [vmem:[%s1462_s1 + $0x34] ss:$8 sps:$4 sm:$0xf8] (!%p190_p2)   ;;  %v1087_v1 = vld [vmem:[%s1462_s1 + $0x44] ss:$8 sps:$4 sm:$0xff] (!%p190_p2)  }
   0x6   : > { %193 = sbr.rel (%p190_p2) target bundleno = 507 (0x1fb), region = 40  ;;  %v1089_v2 = vld [vmem:[%s1462_s1 + $0x30] ss:$8 sps:$4 sm:$0xf8] (!%p190_p2)   ;;  %v1090_v3 = vld [vmem:[%s1462_s1 + $0x40] ss:$8 sps:$4 sm:$0xff] (!%p190_p2)  }
   0x7   : > { %v475_v4 = vrot.slane (!%p190_p2), %v1085_v0, 3  ;;  %v476_v5 = vrot.slane (!%p190_p2), %v1087_v1, 3  ;;  %v1091_v6 = vld [vmem:[%s1462_s1 + $0x54] ss:$8 sps:$4 sm:$0xff] (!%p190_p2)   ;;  %v472_v7 = vrot.slane (!%p190_p2), %v1089_v2, 3  ;;  %v473_v8 = vrot.slane (!%p190_p2), %v1090_v3, 3 }
   0x8   : > { %v1093_v9 = vld [vmem:[%s1462_s1 + $0x50] ss:$8 sps:$4 sm:$0xff] (!%p190_p2)   ;;  %v480_v11 = vrot.slane (!%p190_p2), %v1091_v6, 3  ;;  %v1094_v12 = vld [vmem:[%s1462_s1 + $0x64] ss:$8 sps:$4 sm:$0x3f] (!%p190_p2)  }
   0x9   : > { %v477_v10 = vsel (!%p190_p2), %vm471_vm0, %v475_v4, %v476_v5  ;;  %v474_v13 = vsel (!%p190_p2), %vm471_vm0, %v472_v7, %v473_v8  ;;  %v478_v14 = vrot.slane (!%p190_p2), %v1093_v9, 3  ;;  %v1096_v15 = vld [vmem:[%s1462_s1 + $0x60] ss:$8 sps:$4 sm:$0x3f] (!%p190_p2)   ;;  %v1097_v16 = vld [vmem:[%s1462_s1 + $0x4] ss:$8 sps:$4 sm:$0xff] (!%p190_p2)  }
   0xa   : > { %504 = vmatprep.subr.bf16.mxu0 (!%p190_p2), %v477_v10  ;;  %v481_v17 = vsel (!%p190_p2), %vm471_vm0, %v476_v5, %v480_v11  ;;  %v484_v18 = vrot.slane (!%p190_p2), %v1094_v12, 3  ;;  %v1099_v19 = vld [vmem:[%s1462_s1] ss:$8 sps:$4 sm:$0xff] (!%p190_p2)   ;;  %v482_v21 = vrot.slane (!%p190_p2), %v1096_v15, 3  ;;  %313 = vmatprep.subr.bf16.mxu1 (!%p190_p2), %v1097_v16  ;;  %v1100_v22 = vld [vmem:[%s1462_s1 + $0x14] ss:$8 sps:$4 sm:$0xff] (!%p190_p2)  }
   0xb   : > { %505 = vmatpush1.bf16.msra.mxu0 (!%p190_p2), %v474_v13  ;;  %v479_v20 = vsel (!%p190_p2), %vm471_vm0, %v473_v8, %v478_v14  ;;  %s937_s17 = sshll.u32 (!%p190_p2), %s1167_s19, 1  ;;  %314 = vmatpush1.bf16.msra.mxu1 (!%p190_p2), %v1099_v19  ;;  %v1130_v24 = vmov (!%p190_p2), 0   ;;  %vm306_vm1 = vcmask (!%p190_p2), 1042432   ;;  %vm630_vm2 = vcmask (!%p190_p2), 1045504   ;;  %v1218_v26 = vld [vmem:[%s1462_s1 + $0x7c] ss:$8 sps:$4 sm:$0xff] (!%p190_p2)  }
   0xc   : > { %506 = vmatprep.subr.bf16.mxu0 (!%p190_p2), %v481_v17  ;;  %v485_v23 = vsel (!%p190_p2), %vm471_vm0, %v480_v11, %v484_v18  ;;  %536 = vmatprep.mubr.bf16.mxu0 (!%p190_p2), %v1130_v24  ;;  %p218_p3 = scmp.lt.s32.totalorder (!%p190_p2), %s937_s17, 3  ;;  %vm374_vm3 = vsmask.f32 (!%p190_p2), 3328  ;;  %v1102_v25 = vld [vmem:[%s1462_s1 + $0x6c] ss:$8 sps:$4 sm:$0xfc] (!%p190_p2)   ;;  %v483_v27 = vsel (!%p190_p2), %vm471_vm0, %v478_v14, %v482_v21 }
   0xd   : > { %315 = vmatprep.subr.bf16.mxu1 %v1100_v22  ;;  %345 = vmatprep.mubr.bf16.mxu1 %v1130_v24  ;;  %v1106_v28 = vld [vmem:[%s1462_s1 + $0x10] ss:$8 sps:$4 sm:$0xff]   ;;  %v634_v30 = vrot.slane %v1102_v25, 2  ;;  %v635_v31 = vrot.slane %v1218_v26, 2  ;;  %vm375_vm4 = vsmask.f32 7440 }
   0xe   : > { %s1472_s17 = smov (!%p218_p3, %s937_s17), 3  ;;  %v1107_v29 = vld [vmem:[%s1462_s1 + $0x68] ss:$8 sps:$4 sm:$0xfc]   ;;  %v1231_v32 = vld [vmem:[%s1462_s1 + $0x78] ss:$8 sps:$4 sm:$0xff]   ;;  %vm1286_vm6 = vmor %vm374_vm3, %vm375_vm4 }
   0xf   : > { %507 = vmatpush1.bf16.msra.mxu0 %v479_v20  ;;  %s1075_s28 = smul.u32 12, %s1472_s17  ;;  %316 = vmatpush1.bf16.msra.mxu1 %v1106_v28  ;;  %v1109_v33 = vld [vmem:[%s1462_s1 + $0x24] ss:$8 sps:$4 sm:$0xff]   ;;  %v499_v34 = vsel %vm306_vm1, %v482_v21, 0  ;;  %v631_v35 = vrot.slane %v1107_v29, 2  ;;  %v636_v40 = vsel %vm630_vm2, %v634_v30, %v635_v31  ;;  %v632_v46 = vrot.slane %v1231_v32, 2 }
  0x10   : > { %508 = vmatprep.subr.bf16.mxu0 %v485_v23  ;;  %v1113_v36 = vld [vmem:[%s1462_s1 + $0x20] ss:$8 sps:$4 sm:$0xff]   ;;  %317 = vmatprep.subr.bf16.mxu1 %v1109_v33  ;;  %v1111_v47 = vld [vmem:[%s1462_s1 + $0x8c] ss:$8 sps:$4 sm:$0xff]   ;;  %vm299_vm5 = vcmask 441344   ;;  %vm568_vm7 = vcmask 1046532  }
  0x11   : > { %s1240_s10 = scalar_lea.vmem %s1461_s0, %s1075_s28  ;;  %v253_v48 = vld [vmem:[%s1462_s1 + $0x30] sm:$0x77]  ;;  %v633_v0 = vsel %vm630_vm2, %v631_v35, %v632_v46  ;;  %v639_v1 = vrot.slane %v1111_v47, 2  ;;  %v1116_v4 = vld [vmem:[%s1462_s1 + $0x9c] ss:$8 sps:$4 sm:$0x1f]   ;;  %vm1326_vm8 = vmor %vm306_vm1, %vm568_vm7 }
  0x12   : > { %v1247_v37 = vld [vmem:[%s1240_s10] sm:$0xf]  ;;  %v1250_v38 = vld [vmem:[%s1240_s10 + $0x4] sm:$0xf]  ;;  %v1253_v39 = vld [vmem:[%s1240_s10 + $0x8] sm:$0x1]  ;;  %v949_v56 = vcombine.high %v253_v48, %v253_v48  ;;  %v948_v16 = vcombine.low %v253_v48, %v253_v48 }
  0x13   : > { %509 = vmatpush1.bf16.msra.mxu0 %v483_v27  ;;  %v378_v41 = vshrl.u32 %v1247_v37, 16  ;;  %v381_v42 = vshll.u32 %v1247_v37, 16  ;;  %v387_v43 = vshll.u32 %v1250_v38, 16  ;;  %v391_v44 = vshrl.u32 %v1250_v38, 16  ;;  %318 = vmatpush1.bf16.msra.mxu1 %v1113_v36  ;;  %v1271_v53 = vld [vmem:[%s1240_s10 + $0xc] sm:$0xf] }
  0x14   : > { %963 = vmatprep.subr.msk.bf16.mxu0 %vm306_vm1, %v484_v18  ;;  %v397_v45 = vshll.u32 %v1253_v39, 16  ;;  %v1114_v55 = vld [vmem:[%s1462_s1 + $0x88] ss:$8 sps:$4 sm:$0xff]   ;;  %v1280_v60 = vld [vmem:[%s1240_s10 + $0x14] sm:$0x1]  ;;  %v402_v61 = vshrl.u32 %v1271_v53, 16  ;;  %950 = vmatprep.subr.msk.bf16.mxu1 %vm306_vm1, %v949_v56  ;;  %v640_v18 = vsel %vm630_vm2, %v635_v31, %v639_v1  ;;  %v940_v27 = vcombine.low %v1247_v37, %v1250_v38 }
  0x15   : > { %v380_v49 = vrot.slane %v378_v41, 4  ;;  %v383_v50 = vrot.slane %v381_v42, 5  ;;  %v389_v51 = vrot.slane %v387_v43, 5  ;;  %v393_v52 = vrot.slane %v391_v44, 4  ;;  %v1277_v57 = vld [vmem:[%s1240_s10 + $0x10] sm:$0xf] }
  0x16   : > { %v399_v54 = vrot.slane %v397_v45, 5  ;;  %v405_v62 = vshll.u32 %v1271_v53, 16  ;;  %v411_v2 = vshll.u32 %v1277_v57, 16  ;;  %v415_v3 = vshrl.u32 %v1277_v57, 16  ;;  %v780_v63 = vld [vmem:[%s1464_s3 + $0xa0] sm:$0xff]  ;;  %p224_p4 = scmp.lt.s32.totalorder %s1167_s19, 1 }
  0x17   : > { %511 = vmatpush1.bf16.msra.mxu0 %v499_v34  ;;  %v384_v58 = vor.u32 %v383_v50, %v380_v49  ;;  %v394_v59 = vor.u32 %v393_v52, %v389_v51  ;;  %v404_v7 = vrot.slane %v402_v61, 4  ;;  %v637_v9 = vrot.slane %v1114_v55, 2  ;;  %v1119_v21 = vld [vmem:[%s1462_s1 + $0x98] ss:$8 sps:$4 sm:$0x1f]   ;;  %v761_v55 = vld [vmem:[%s1464_s3 + $0x8] sm:$0xff] }
  0x18   : > { %663 = vmatprep.subr.bf16.mxu0 %v636_v40  ;;  %v407_v8 = vrot.slane %v405_v62, 5  ;;  %v413_v10 = vrot.slane %v411_v2, 5  ;;  %v417_v11 = vrot.slane %v415_v3, 4  ;;  %v421_v12 = vshll.u32 %v1280_v60, 16  ;;  %v776_v52 = vld [vmem:[%s1464_s3 + $0x80] sm:$0xff]  ;;  %v763_v61 = vld [vmem:[%s1464_s3 + $0x18] sm:$0xff] }
  0x19   : > { %v385_v5 = vrot.slane %v384_v58, 4  ;;  %v395_v6 = vrot.slane %v394_v59, 4  ;;  %v643_v23 = vrot.slane %v1116_v4, 2  ;;  %v308_v25 = vsel %vm306_vm1, %v948_v16, 0  ;;  %v779_v58 = vld [vmem:[%s1464_s3 + $0x98] sm:$0xff]  ;;  %v764_v2 = vld [vmem:[%s1464_s3 + $0x20] sm:$0xff] }
  0x1a   : > { %v408_v15 = vor.u32 %v407_v8, %v404_v7  ;;  %v418_v19 = vor.u32 %v417_v11, %v413_v10  ;;  %v423_v20 = vrot.slane %v421_v12, 5  ;;  %320 = vmatpush1.bf16.msra.mxu1 %v308_v25  ;;  %v572_v26 = vrot.slane %v1250_v38, 5  ;;  %v765_v3 = vld [vmem:[%s1464_s3 + $0x28] sm:$0xff]  ;;  %v766_v8 = vld [vmem:[%s1464_s3 + $0x30] sm:$0xff]  ;;  %v784_v11 = vld [vmem:[%s1464_s3 + $0xc0] sm:$0xff]  ;;  %s1474_s19 = smov (!%p224_p4, %s1167_s19), 1 }
  0x1b   : > { %v390_v13 = vsel %vm1286_vm6, %v385_v5, %v389_v51  ;;  %v400_v14 = vsel %vm1286_vm6, %v395_v6, %v399_v54  ;;  %v638_v30 = vsel %vm630_vm2, %v632_v46, %v637_v9  ;;  %v641_v32 = vrot.slane %v1119_v21, 2  ;;  %v782_v5 = vld [vmem:[%s1464_s3 + $0xb0] sm:$0xff]  ;;  %v783_v6 = vld [vmem:[%s1464_s3 + $0xb8] sm:$0xff]  ;;  %v785_v12 = vld [vmem:[%s1464_s3 + $0xc8] sm:$0xff]  ;;  %s939_s22 = sshll.u32 %s1474_s19, 1 }
  0x1c   : > { %v953_v17 = vcombine.low %v390_v13, %v400_v14  ;;  %v409_v22 = vrot.slane %v408_v15, 4  ;;  %v419_v28 = vrot.slane %v418_v19, 4  ;;  %v644_v33 = vsel %vm630_vm2, %v639_v1, %v643_v23  ;;  %v768_v14 = vld [vmem:[%s1464_s3 + $0x40] sm:$0xff]  ;;  %v769_v15 = vld [vmem:[%s1464_s3 + $0x48] sm:$0xff]  ;;  %v771_v21 = vld [vmem:[%s1464_s3 + $0x58] sm:$0xff]  ;;  %s227_s27 = scalar_lea.vmem %s1466_s5, %s939_s22 }
  0x1d   : > { %951 = vmatmul.mubr.msk.bf16.vlgmr.msra.gmra.mrb[0].mxu1 %vm299_vm5, %v940_v27  ;;  %v575_v35 = vrot.slane %v1253_v39, 5  ;;  %v966_v36 = vrot.slane %v1247_v37, 9  ;;  %v574_v38 = vrot.slane %v572_v26, 4  ;;  %v642_v40 = vsel %vm630_vm2, %v637_v9, %v641_v32  ;;  %v767_v9 = vld [vmem:[%s1464_s3 + $0x38] sm:$0xff]  ;;  %v789_v25 = vld [vmem:[%s1464_s3 + $0xe8] sm:$0xff] }
  0x1e   : > { %964 = vmatmul.mubr.msk.bf16.vlgmr.msra.gmra.mrb[0].mxu0 %vm299_vm5, %v953_v17  ;;  %v414_v29 = vsel %vm1286_vm6, %v409_v22, %v413_v10  ;;  %v424_v31 = vsel %vm1286_vm6, %v419_v28, %v423_v20  ;;  %355 = vmatprep.mubr.bf16.mxu1 %v1130_v24  ;;  %v941_v42 = vcombine.low %v1271_v53, %v1277_v57  ;;  %v579_v43 = vrot.slane %v1277_v57, 5  ;;  %v778_v57 = vld [vmem:[%s1464_s3 + $0x90] sm:$0xff]  ;;  %v772_v28 = vld [vmem:[%s1464_s3 + $0x60] sm:$0xff] }
  0x1f   : > { %664 = vmatpush1.bf16.msra.mxu0 %v633_v0  ;;  %546 = vmatprep.mubr.bf16.mxu0 %v1130_v24  ;;  %v954_v34 = vcombine.low %v414_v29, %v424_v31  ;;  %v573_v37 = vsel %vm1326_vm8, %v966_v36, %v572_v26  ;;  %v576_v39 = vsel %vm1326_vm8, %v574_v38, %v575_v35  ;;  %v658_v44 = vsel %vm306_vm1, %v641_v32, 0  ;;  %v781_v0 = vld [vmem:[%s1464_s3 + $0xa8] sm:$0xff]  ;;  %v786_v17 = vld [vmem:[%s1464_s3 + $0xd0] sm:$0xff]  ;;  %v791_v31 = vld [vmem:[%s1464_s3 + $0xf8] sm:$0xff] }
  0x20   : > { %665 = vmatprep.subr.bf16.mxu0 %v640_v18  ;;  %v968_v45 = vcombine.low %v573_v37, %v576_v39  ;;  %v967_v46 = vrot.slane %v1271_v53, 9  ;;  %v581_v47 = vrot.slane %v579_v43, 4  ;;  %v582_v48 = vrot.slane %v1280_v60, 5  ;;  %v777_v53 = vld [vmem:[%s1464_s3 + $0x88] sm:$0xff]  ;;  %v762_v60 = vld [vmem:[%s1464_s3 + $0x10] sm:$0xff]  ;;  %v787_v18 = vld [vmem:[%s1464_s3 + $0xd8] sm:$0xff] }
  0x21   : > { %v1019_v54 = vpack.c.bf16 %v777_v53, %v776_v52  ;;  %v1023_v59 = vpack.c.bf16 %v779_v58, %v778_v57  ;;  %v1025_v62 = vpack.c.bf16 %v763_v61, %v762_v60  ;;  %v1027_v1 = vpack.c.bf16 %v781_v0, %v780_v63  ;;  %v770_v20 = vld [vmem:[%s1464_s3 + $0x50] sm:$0xff]  ;;  %v773_v26 = vld [vmem:[%s1464_s3 + $0x68] sm:$0xff]  ;;  %v235_v39 = vld [vmem:[%s1463_s2] sm:$0x3] }
  0x22   : > { %v580_v49 = vsel %vm1326_vm8, %v967_v46, %v579_v43  ;;  %v583_v50 = vsel %vm1326_vm8, %v581_v47, %v582_v48  ;;  %v1029_v4 = vpack.c.bf16 %v765_v3, %v764_v2  ;;  %v1031_v7 = vpack.c.bf16 %v783_v6, %v782_v5 }
  0x23   : > { %666 = vmatpush1.bf16.msra.mxu0 %v638_v30  ;;  %v969_v51 = vcombine.low %v580_v49, %v583_v50  ;;  %1020 = vmatprep.subr.bf16.mxu1 %v1019_v54  ;;  %v1033_v10 = vpack.c.bf16 %v767_v9, %v766_v8  ;;  %v1035_v13 = vpack.c.bf16 %v785_v12, %v784_v11  ;;  %v790_v30 = vld [vmem:[%s1464_s3 + $0xf0] sm:$0xff]  ;;  %v237_v36 = vlaneseq }
  0x24   : > { %667 = vmatprep.subr.bf16.mxu0 %v644_v33  ;;  %v1037_v16 = vpack.c.bf16 %v769_v15, %v768_v14  ;;  %v1039_v19 = vpack.c.bf16 %v787_v18, %v786_v17  ;;  %v1041_v22 = vpack.c.bf16 %v771_v21, %v770_v20  ;;  %v1045_v29 = vpack.c.bf16 %v773_v26, %v772_v28  ;;  %v774_v33 = vld [vmem:[%s1464_s3 + $0x70] sm:$0xff] }
  0x25   : > { %952 = vmatmul.mubr.msk.bf16.gmra.mrb[4].mxu1 %vm299_vm5, %v941_v42  ;;  %v1047_v32 = vpack.c.bf16 %v791_v31, %v790_v30  ;;  %v238_v38 = vshrl.u32 %v237_v36, 7  ;;  %vm803_vm9 = vcmask 1041409  }
  0x26   : > { %965 = vmatmul.mubr.msk.bf16.gmra.mrb[4].mxu0 %vm299_vm5, %v954_v34  ;;  %v775_v34 = vld [vmem:[%s1464_s3 + $0x78] sm:$0xff] }
  0x27   : > { %668 = vmatpush1.bf16.msra.mxu0 %v642_v40  ;;  %695 = vmatprep.mubr.bf16.mxu0 %v1130_v24  ;;  %v1049_v35 = vpack.c.bf16 %v775_v34, %v774_v33  ;;  %v239_v42 = vsub.s32 0, %v238_v38  ;;  %v243_v43 = vsub.s32 1, %v238_v38 }
  0x28   : > { %978 = vmatprep.subr.msk.bf16.mxu0 %vm306_vm1, %v643_v23  ;;  %v788_v23 = vld [vmem:[%s1464_s3 + $0xe0] sm:$0xff] }
  0x29   : > { %v1043_v27 = vpack.c.bf16 %v789_v25, %v788_v23  ;;  %v244_v46 = vrot.slane %v235_v39, %v243_v43 }
  0x2b   : > { %670 = vmatpush1.bf16.msra.mxu0 %v658_v44 }
  0x2e   : > { %979 = vmatmul.mubr.msk.bf16.vlgmr.msra.gmra.mrb[0].mxu0 %vm299_vm5, %v968_v45  ;;  %v240_v45 = vrot.slane %v235_v39, %v239_v42 }
  0x2f   : > { %705 = vmatprep.mubr.bf16.mxu0 %v1130_v24  ;;  %v760_v24 = vld [vmem:[%s1464_s3] sm:$0xff] }
  0x30   : > { %v1021_v56 = vpack.c.bf16 %v761_v55, %v760_v24 }
  0x32   : > { %1022 = vmatpush3.bf16.msra.mxu1 %v1021_v56 }
  0x33   : > { %1024 = vmatprep.subr.bf16.mxu1 %v1023_v59 }
  0x36   : > { %980 = vmatmul.mubr.msk.bf16.gmra.mrb[4].mxu0 %vm299_vm5, %v969_v51  ;;  %1026 = vmatpush3.bf16.msra.mxu1 %v1025_v62 }
  0x37   : > { %1028 = vmatprep.subr.bf16.mxu1 %v1027_v1 }
  0x3a   : > { %1030 = vmatpush3.bf16.msra.mxu1 %v1029_v4 }
  0x3b   : > { %1032 = vmatprep.subr.bf16.mxu1 %v1031_v7 }
  0x3e   : > { %1034 = vmatpush3.bf16.msra.mxu1 %v1033_v10 }
  0x3f   : > { %1036 = vmatprep.subr.bf16.mxu1 %v1035_v13 }
  0x42   : > { %1038 = vmatpush3.bf16.msra.mxu1 %v1037_v16 }
  0x43   : > { %1040 = vmatprep.subr.bf16.mxu1 %v1039_v19 }
  0x46   : > { %1042 = vmatpush3.bf16.msra.mxu1 %v1041_v22 }
  0x47   : > { %1044 = vmatprep.subr.bf16.mxu1 %v1043_v27 }
  0x4a   : > { %1046 = vmatpush3.bf16.msra.mxu1 %v1045_v29 }
  0x4b   : > { %1048 = vmatprep.subr.bf16.mxu1 %v1047_v32 }
  0x4e   : > { %1050 = vmatpush3.bf16.msra.mxu1 %v1049_v35 }
  0xf0   : > { %v347_v40 = vpop.f32.mrb[0].mxu1 }
  0xf1   : > { %v349_v41 = vpop.f32.mrb[1].mxu1  ;;  %v366_v49 = vadd.f32 %v347_v40, %v240_v45 }
  0xf2   : > { %v351_v37 = vpop.f32.mrb[2].mxu1  ;;  %v367_v51 = vadd.f32 %v349_v41, %v244_v46 }
  0xf3   : > { %v353_v44 = vpop.f32.mrb[3].mxu1  ;;  %v368_v54 = vadd.f32 %v351_v37, %v240_v45 }
  0xf4   : > { %v369_v56 = vadd.f32 %v353_v44, %v244_v46 }
  0xf8   : > { %v357_v47 = vpop.f32.mrb[4].mxu1 }
  0xf9   : > { %v359_v48 = vpop.f32.mrb[5].mxu1  ;;  %v370_v0 = vadd.f32 %v357_v47, %v240_v45 }
  0xfa   : > { %v361_v50 = vpop.f32.mrb[6].mxu1  ;;  %v371_v3 = vadd.f32 %v359_v48, %v244_v46 }
  0xfb   : > { %v363_v52 = vpop.f32.mrb[7].mxu1  ;;  %v372_v8 = vadd.f32 %v361_v50, %v240_v45  ;;  %v981_v50 = vld [vmem:[%s1465_s4] ss:$0 sm:$0xff] }
  0xfc   : > { %v373_v12 = vadd.f32 %v363_v52, %v244_v46 }
 0x101   : > { %v697_v53 = vpop.f32.mrb[0].mxu0 }
 0x102   : > { %v1052_v24 = vadd.f32 %v697_v53, %v366_v49  ;;  %v699_v55 = vpop.f32.mrb[1].mxu0 }
 0x103   : > { %v1054_v57 = vadd.f32 %v699_v55, %v367_v51  ;;  %v701_v58 = vpop.f32.mrb[2].mxu0 }
 0x104   : > { %v1056_v59 = vadd.f32 %v701_v58, %v368_v54  ;;  %v703_v60 = vpop.f32.mrb[3].mxu0  ;;  %v724_v62 = vmax.f32 %v1052_v24, 0.0 }
 0x105   : > { %v1058_v61 = vadd.f32 %v703_v60, %v369_v56  ;;  %v725_v1 = vmax.f32 %v1054_v57, 0.0 }
 0x106   : > { %v726_v63 = vmax.f32 %v1056_v59, 0.0 }
 0x107   : > { %v727_v2 = vmax.f32 %v1058_v61, 0.0 }
 0x108   : > { %v732_v4 = vadd.f32 %v726_v63, %v724_v62 }
 0x109   : > { %v739_v5 = vadd.f32 %v727_v2, %v725_v1  ;;  %v707_v6 = vpop.f32.mrb[4].mxu0 }
 0x10a   : > { %v733_v7 = vrot.slane %v732_v4, 4  ;;  %v1060_v9 = vadd.f32 %v707_v6, %v370_v0  ;;  %v709_v10 = vpop.f32.mrb[5].mxu0 }
 0x10b   : > { %v740_v11 = vrot.slane %v739_v5, 4  ;;  %v1062_v13 = vadd.f32 %v709_v10, %v371_v3  ;;  %v711_v14 = vpop.f32.mrb[6].mxu0 }
 0x10c   : > { %v734_v15 = vadd.f32 %v733_v7, %v732_v4  ;;  %v1064_v16 = vadd.f32 %v711_v14, %v372_v8  ;;  %v713_v17 = vpop.f32.mrb[7].mxu0  ;;  %v728_v20 = vmax.f32 %v1060_v9, 0.0 }
 0x10d   : > { %v741_v18 = vadd.f32 %v740_v11, %v739_v5  ;;  %v1066_v19 = vadd.f32 %v713_v17, %v373_v12  ;;  %v729_v22 = vmax.f32 %v1062_v13, 0.0 }
 0x10e   : > { %v730_v21 = vmax.f32 %v1064_v16, 0.0  ;;  %v735_v25 = vrot.slane %v734_v15, 2 }
 0x10f   : > { %v731_v23 = vmax.f32 %v1066_v19, 0.0  ;;  %v742_v28 = vrot.slane %v741_v18, 2 }
 0x110   : > { %v746_v27 = vadd.f32 %v730_v21, %v728_v20  ;;  %v736_v31 = vadd.f32 %v735_v25, %v734_v15 }
 0x111   : > { %v753_v26 = vadd.f32 %v731_v23, %v729_v22  ;;  %v743_v33 = vadd.f32 %v742_v28, %v741_v18 }
 0x112   : > { %v747_v29 = vrot.slane %v746_v27, 4  ;;  %v737_v38 = vrot.slane %v736_v31, 1 }
 0x113   : > { %v754_v30 = vrot.slane %v753_v26, 4  ;;  %v744_v42 = vrot.slane %v743_v33, 1 }
 0x114   : > { %v748_v32 = vadd.f32 %v747_v29, %v746_v27  ;;  %v738_v43 = vadd.f32 %v737_v38, %v736_v31 }
 0x115   : > { %v755_v34 = vadd.f32 %v754_v30, %v753_v26  ;;  %v745_v45 = vadd.f32 %v744_v42, %v743_v33 }
 0x116   : > { %v749_v35 = vrot.slane %v748_v32, 2 }
 0x117   : > { %v756_v36 = vrot.slane %v755_v34, 2 }
 0x118   : > { %v750_v40 = vadd.f32 %v749_v35, %v748_v32 }
 0x119   : > { %v757_v41 = vadd.f32 %v756_v36, %v755_v34 }
 0x11a   : > { %v751_v37 = vrot.slane %v750_v40, 1 }
 0x11b   : > { %v758_v39 = vrot.slane %v757_v41, 1 }
 0x11c   : > { %v752_v44 = vadd.f32 %v751_v37, %v750_v40 }
 0x11d   : > { %v759_v46 = vadd.f32 %v758_v39, %v757_v41 }
 0x11e   : > { %v804_v47 = vsel %vm803_vm9, %v752_v44, %v738_v43 }
 0x11f   : > { %v805_v48 = vsel %vm803_vm9, %v759_v46, %v745_v45 }
 0x120   : > { %872 = vmatprep.mubr.f32.mxu1 %v805_v48 }
 0x121   : > { %873 = vmatmul.mubr.f32.vlgmr.msra.gmra.mrb[8].mxu1 %v804_v47 }
 0x1f4   : > { %v1016_v49 = vpop.f32.mrb[8].mxu1 }
 0x1f5   : > { %v1017_v51 = vpop.f32.mrb[9].mxu1 }
 0x1f6   : > { %v1018_v52 = vadd.f32 %v1017_v51, %v1016_v49 }
 0x1f8   : > { %v875_v53 = vadd.f32 %v1018_v52, %v981_v50 }
 0x1fa   : > { %878 = vst [vmem:[%s227_s27] sm:$0x3] %v875_v53 }
 0x1fb PF: > { %s15_s18 = sadd.s32 1, %s1128_s18  }
 0x1fc   : > { %p12_p5 = scmp.ge.s32.totalorder %s15_s18, 4  }
 0x1fe   :  { %14 = sbr.rel (!%p12_p5) target bundleno = 1 (0x1), region = 70 }

</bundles_post_ra>
